<compile_context>
chip_gen: v5e
topology: v5e:2x2
jax: 0.10.0
libtpu: 0.0.40
codegen_flags: <defaults>
</compile_context>

<pallas_src>
import functools
import math

import jax
import jax.numpy as jnp
from jax.experimental import pallas as pl
from jax.experimental.pallas import tpu as pltpu


_SQRT_2_OVER_PI = math.sqrt(2.0 / math.pi)
_COEF = 0.044715 * _SQRT_2_OVER_PI          # fold 0.044715 * sqrt(2/pi)

_LANES = 128
_SMALL_SLAB_BYTES = 256 * 1024              # below this: single block, no TC split


@functools.lru_cache(maxsize=1)
def _tpu_generation():
    """Best-effort TPU generation detection for per-generation tuning."""
    try:
        kind = jax.devices()[0].device_kind.lower()
    except Exception:
        return "unknown"
    if "v7" in kind or "7x" in kind:
        return "v7x"
    if "v6" in kind:
        return "v6e"
    if "v5" in kind:
        return "v5"
    return "unknown"


def _block_budget():
    """(target block bytes, vmem_limit_bytes) per TPU generation."""
    if _tpu_generation() == "v7x":
        # 3.2 TB/s HBM: amortize the ~0.35 us/step overhead with bigger blocks.
        # Footprint: 4 x 4 MiB double-buffered I/O + a few whole-block temps
        # stays well under the 48 MiB scoped limit / 64 MiB physical VMEM.
        return 4 * 1024 * 1024, 48 * 1024 * 1024
    # v6e / v5e / unknown: 2 MiB blocks are already at/near the HBM roofline.
    return 2 * 1024 * 1024, 32 * 1024 * 1024


def _gelu_kernel(x_ref, o_ref, *, compute_dtype):
    # compute_dtype is bf16 on v6e/v7x for bf16 I/O (packed VPU/EUP math,
    # no pack/unpack casts), f32 otherwise.
    x = x_ref[...].astype(compute_dtype)
    # Horner form: sqrt(2/pi) * (x + 0.044715*x^3) == x * (A + B*x*x)
    inner = x * (_SQRT_2_OVER_PI + _COEF * (x * x))
    y = 0.5 * x * (1.0 + jnp.tanh(inner))
    o_ref[...] = y.astype(o_ref.dtype)


def _gelu_2d(x2d):
    """Run the elementwise kernel over a (rows, 128) lane-dense slab."""
    rows, lanes = x2d.shape
    itemsize = jnp.dtype(x2d.dtype).itemsize
    bytes_per_row = lanes * itemsize
    total_bytes = rows * bytes_per_row
    block_bytes, vmem_limit = _block_budget()

    if total_bytes <= _SMALL_SLAB_BYTES:
        # Tiny slab: single block == full array dims (satisfies tiling rules).
        block_rows = rows
        grid = (1,)
    else:
        # rows a multiple of 32 covers f32/bf16/int8 sublane requirements.
        target_rows = max(32, ((block_bytes // bytes_per_row) // 32) * 32)
        # At least 2 blocks and an even, equalized block count so both v7x
        # TensorCores get (nearly) equal work -- no 8:1 tail straggler.
        nblocks = max(2, -(-rows // target_rows))
        if nblocks % 2:
            nblocks += 1
        block_rows = ((-(-rows // nblocks) + 31) // 32) * 32
        grid = (pl.cdiv(rows, block_rows),)   # ragged last block masked by Pallas

    gen = _tpu_generation()
    use_bf16_math = (x2d.dtype == jnp.bfloat16) and gen in ("v6e", "v7x")
    compute_dtype = jnp.bfloat16 if use_bf16_math else jnp.float32
    kernel = functools.partial(_gelu_kernel, compute_dtype=compute_dtype)

    n = rows * lanes
    cost = pl.CostEstimate(
        flops=10 * n,
        transcendentals=n,
        bytes_accessed=2 * n * itemsize,
    )

    # TODO(synk): on v7x, verify in the xprof trace that the "parallel" grid
    # actually shards across both TensorCores; if not, add a leading size-2
    # pltpu.CORE_PARALLEL axis (v7x only) and split rows explicitly.
    # TODO(synk): sweep pipeline_mode=pl.Buffered(3) on the in_spec if the
    # trace shows exposed DMA at step boundaries.
    return pl.pallas_call(
        kernel,
        out_shape=jax.ShapeDtypeStruct((rows, lanes), x2d.dtype),
        grid_spec=pltpu.PrefetchScalarGridSpec(
            num_scalar_prefetch=0,
            grid=grid,
            in_specs=[pl.BlockSpec((block_rows, lanes), lambda i: (i, 0))],
            out_specs=pl.BlockSpec((block_rows, lanes), lambda i: (i, 0)),
        ),
        compiler_params=pltpu.CompilerParams(
            dimension_semantics=("parallel",),
            vmem_limit_bytes=vmem_limit,
        ),
        cost_estimate=cost,
    )(x2d)


def _gelu_jnp(x):
    """Plain-JAX tanh-approx GELU (used only for <128-element ragged tails)."""
    xf = x.astype(jnp.float32)
    y = 0.5 * xf * (1.0 + jnp.tanh(_SQRT_2_OVER_PI * (xf + 0.044715 * xf**3)))
    return y.astype(x.dtype)


def gelu(x):
    """Elementwise tanh-approx GELU via Pallas. Works on any shape/float dtype."""
    orig_shape = x.shape
    n = x.size
    if n == 0:
        return x

    if n % _LANES == 0:
        # Common case (transformer activations): free reshape, no extra HBM traffic.
        out2d = _gelu_2d(x.reshape(n // _LANES, _LANES))
        return out2d.reshape(orig_shape)

    # Ragged case: kernel on the 128-aligned prefix, plain jnp on the <128-elem
    # tail.  Avoids the previous full-array pad + slice (2 extra HBM passes).
    flat = x.reshape(-1)
    n_aligned = (n // _LANES) * _LANES
    if n_aligned == 0:
        return _gelu_jnp(x)
    head = _gelu_2d(flat[:n_aligned].reshape(n_aligned // _LANES, _LANES)).reshape(-1)
    tail = _gelu_jnp(flat[n_aligned:])
    return jnp.concatenate([head, tail]).reshape(orig_shape)


def _gelu_ref(x):
    xf = x.astype(jnp.float32)
    y = 0.5 * xf * (1.0 + jnp.tanh(_SQRT_2_OVER_PI * (xf + 0.044715 * xf**3)))
    return y.astype(x.dtype)


if __name__ == "__main__":
    key = jax.random.PRNGKey(0)
    k1, k2, k3, k4 = jax.random.split(key, 4)

    # Primary small transformer-like activation: (batch, seq, hidden)
    x = jax.random.normal(k1, (2, 8, 32), dtype=jnp.float32)
    out = gelu(x)
    jax.block_until_ready(out)
    assert out.shape == x.shape and out.dtype == x.dtype
    assert jnp.allclose(out, _gelu_ref(x), atol=1e-5, rtol=1e-5)

    # Ragged size (not a multiple of 128) exercises the prefix+tail path.
    x_r = jax.random.normal(k2, (3, 5, 7), dtype=jnp.float32)
    out_r = gelu(x_r)
    jax.block_until_ready(out_r)
    assert out_r.shape == x_r.shape
    assert jnp.allclose(out_r, _gelu_ref(x_r), atol=1e-5, rtol=1e-5)

    # bf16 path: narrow-dtype I/O; bf16 math on v6e/v7x, f32 math elsewhere.
    x_b = jax.random.normal(k3, (2, 8, 64), dtype=jnp.bfloat16)
    out_b = gelu(x_b)
    jax.block_until_ready(out_b)
    assert out_b.dtype == jnp.bfloat16
    assert jnp.allclose(out_b.astype(jnp.float32),
                        _gelu_ref(x_b).astype(jnp.float32), atol=1e-2, rtol=1e-2)

    # Medium shape exercising the multi-block grid with balanced block sizes
    # (rows = 4608 -> two equal 2304-row blocks instead of 4096 + 512).
    x_m = jax.random.normal(k4, (9, 512, 128), dtype=jnp.float32)
    out_m = gelu(x_m)
    jax.block_until_ready(out_m)
    assert jnp.allclose(out_m, _gelu_ref(x_m), atol=1e-5, rtol=1e-5)

    print("KERNEL_OK")
</pallas_src>

<mosaic_0001>
module attributes {stable_mosaic.version = 11 : i64} {
  func.func @_gelu_kernel(%arg0: i32, %arg1: memref<4x128xf32, #tpu.memory_space<vmem>>, %arg2: memref<4x128xf32, #tpu.memory_space<vmem>>) attributes {dimension_semantics = [#tpu.dimension_semantics<parallel>], iteration_bounds = array<i64: 1>, scalar_prefetch = 0 : i64, scratch_operands = 0 : i64, tpu.core_type = #tpu.core_type<tc>, window_params = [{transform_indices = @transform_0, window_bounds = array<i64: 4, 128>}, {transform_indices = @transform_1, window_bounds = array<i64: 4, 128>}]} {
    %c0 = arith.constant 0 : index
    %c0_0 = arith.constant 0 : index
    %0 = vector.load %arg1[%c0, %c0_0] : memref<4x128xf32, #tpu.memory_space<vmem>>, vector<4x128xf32>
    %1 = arith.mulf %0, %0 : vector<4x128xf32>
    %cst = arith.constant 0.0356774069 : f32
    %2 = vector.broadcast %cst : f32 to vector<4x128xf32>
    %3 = arith.mulf %2, %1 : vector<4x128xf32>
    %cst_1 = arith.constant 0.797884583 : f32
    %4 = vector.broadcast %cst_1 : f32 to vector<4x128xf32>
    %5 = arith.addf %4, %3 : vector<4x128xf32>
    %6 = arith.mulf %0, %5 : vector<4x128xf32>
    %cst_2 = arith.constant 5.000000e-01 : f32
    %7 = vector.broadcast %cst_2 : f32 to vector<4x128xf32>
    %8 = arith.mulf %7, %0 : vector<4x128xf32>
    %9 = math.tanh %6 : vector<4x128xf32>
    %cst_3 = arith.constant 1.000000e+00 : f32
    %10 = vector.broadcast %cst_3 : f32 to vector<4x128xf32>
    %11 = arith.addf %10, %9 : vector<4x128xf32>
    %12 = arith.mulf %8, %11 : vector<4x128xf32>
    %c0_4 = arith.constant 0 : index
    %c0_5 = arith.constant 0 : index
    %13 = vector.load %arg2[%c0_4, %c0_5] : memref<4x128xf32, #tpu.memory_space<vmem>>, vector<4x128xf32>
    tpu.vector_store %arg2[%c0_4, %c0_5], %12 {strides = array<i32>} : memref<4x128xf32, #tpu.memory_space<vmem>>, vector<4x128xf32>,
    return
  }
  func.func @transform_0(%arg0: i32) -> (i32, i32) {
    %c0_i32 = arith.constant 0 : i32
    %c0_i32_0 = arith.constant 0 : i32
    return %arg0, %c0_i32 : i32, i32
  }
  func.func @transform_1(%arg0: i32) -> (i32, i32) {
    %c0_i32 = arith.constant 0 : i32
    %c0_i32_0 = arith.constant 0 : i32
    return %arg0, %c0_i32 : i32, i32
  }
}

</mosaic_0001>

<bundles_post_ra>
// kernel: tpu_custom_call.1
= control target key start
LH: loop header
LB: loop body
LE: loop exit
PB: predicated region body
PF: predicated region fallthrough
CT: control target
= control target key end

     0   :  { %6 = vsyncpa [#allocation3], 0  ;;  %s124_s0 = inlined_call_operand.hbm [shape: f32[4,128], index: 0, kind: input, shape index: {}]   ;;  %s125_s1 = inlined_call_operand.hbm [shape: f32[4,128], index: 1, kind: output, shape index: {}]  }
   0x1   :  { %7 = vsyncpa [#allocation4], 0  ;;  %s13_s8 = sshll.u32 %s124_s0, 4  ;;  %s106_s9 = smov [#allocation2]   ;;  %s14_s8 = int_to_ptr.hbm [resolvable:$true] %s13_s8 }
   0x2   :  { %s15_s10 = sshll.u32 %s106_s9, 4  ;;  %s16_s10 = int_to_ptr.vmem [resolvable:$true] %s15_s10 }
   0x3   :  { %18 = dma.hbm_to_vmem [thread:$0]  %s14_s8, 64, %s16_s10, [#allocation3]  }
   0x4   :  { %102 = dma.done.wait [#allocation3], 64  }
   0x5   :  { %103 = vsyncadd [#allocation3], 4294967232  ;;  %v23_v0 = vld [vmem:[#allocation2] sm:$0xf]  ;;  %s107_s11 = smov [#allocation5]   ;;  %s40_s0 = sshll.u32 %s125_s1, 4  ;;  %s41_s0 = int_to_ptr.hbm [resolvable:$true] %s40_s0 }
   0x6   :  { %v24_v1 = vmul.f32 %v23_v0, %v23_v0  ;;  %v28_v5 = vmul.f32 0.5, %v23_v0  ;;  %s38_s12 = sshll.u32 %s107_s11, 4  ;;  %s39_s12 = int_to_ptr.vmem [resolvable:$true] %s38_s12 }
   0x8   :  { %v25_v2 = vmul.f32 0.035677407, %v24_v1 }
   0xa   :  { %v26_v3 = vadd.f32 0.7978846, %v25_v2 }
   0xc   :  { %v27_v4 = vmul.f32 %v26_v3, %v23_v0 }
   0xe   :  { %52 = vtanh.f32 %v27_v4 }
  0x14   :  { %v53_v6 = vpop.eup %52 }
  0x15   :  { %v30_v7 = vadd.f32 1.0, %v53_v6 }
  0x17   :  { %v31_v8 = vmul.f32 %v30_v7, %v28_v5 }
  0x19   :  { %32 = vst [vmem:[#allocation5] sm:$0xf] %v31_v8 }
  0x1a   :  { %43 = dma.vmem_to_hbm [thread:$0]  %s39_s12, 64, %s41_s0, [#allocation4]  }
  0x1b   :  { %104 = dma.done.wait [#allocation4], 64  }
  0x1c   :  { %105 = vsyncadd [#allocation4], 4294967232 }
  0x1d   :  { %48 = vsyncpa [#allocation3], 1 }
  0x1e   :  { %49 = vsyncpa [#allocation4], 1 }

</bundles_post_ra>
